<compile_context>
chip_gen: v7x
topology: tpu7x:2x2x1
jax: 0.10.0
libtpu: 0.0.40
codegen_flags: <defaults>
</compile_context>

<pallas_src>
import functools

import jax
import jax.numpy as jnp
from jax.experimental import pallas as pl
from jax.experimental.pallas import tpu as pltpu


def _cross_entropy_kernel(pred_ref, gt_ref, out_ref, *, batch_size, tile_b, scale,
                          accumulate):
    # pred_ref: [TB, C] native dtype; gt_ref: [TB, 1] i32;
    # out_ref:  [8, 128] f32 resident accumulator (accumulate=True)
    #        or [1, 8, 128] f32 per-tile partial block (accumulate=False).
    pred = pred_ref[...]                                           # [TB, C] native
    tb, c = pred.shape
    logits = pred.astype(jnp.float32)                              # [TB, C] f32 (lse math)

    # numerically-stable log-sum-exp per row; sub+exp+sum fuse into the reduction
    row_max = jnp.max(logits, axis=-1, keepdims=True)              # [TB, 1]
    sum_exp = jnp.sum(jnp.exp(logits - row_max), axis=-1, keepdims=True)

    # pick the ground-truth logit by masking the NATIVE-dtype tile (exact: only one
    # non-zero element per row), then upcast the per-row scalar.
    class_ids = jax.lax.broadcasted_iota(jnp.int32, (tb, c), 1)    # [TB, C]
    gt = gt_ref[...]                                               # [TB, 1] i32
    picked = jnp.sum(jnp.where(class_ids == gt, pred, 0),
                     axis=-1, keepdims=True).astype(jnp.float32)   # [TB, 1]

    per_example_loss = jnp.log(sum_exp) + row_max - picked         # [TB, 1]

    # mask rows of the (possibly partial) last tile that fall beyond the true B;
    # select (not multiply) so inf/nan from garbage padding rows cannot leak in.
    row_start = pl.program_id(0) * tile_b
    row_ids = row_start + jax.lax.broadcasted_iota(jnp.int32, (tb, 1), 0)
    valid = row_ids < batch_size
    tile_sum = jnp.sum(jnp.where(valid, per_example_loss, 0.0)) * scale  # 1/B folded in

    if accumulate:
        # single-TC chips: resident accumulator, init once, write back once at the end
        @pl.when(pl.program_id(0) == 0)
        def _init():
            out_ref[...] = jnp.zeros_like(out_ref)

        out_ref[...] += tile_sum
    else:
        # multi-TC (v7x): lane-dense (8,128)-aligned partial block per grid step
        out_ref[...] = jnp.full(out_ref.shape, tile_sum, dtype=out_ref.dtype)


def _round_up(x, m):
    return ((x + m - 1) // m) * m


def _device_kind():
    try:
        return jax.devices()[0].device_kind.lower()
    except Exception:  # detection is best-effort; fall back to single-TC layout
        return ""


def classifier_loss(pred: jax.Array, gt: jax.Array, *, block_rows=None) -> jax.Array:
    """Cross-entropy loss, mean reduction. pred: [B, C] float (f32/bf16), gt: [B] int."""
    B, C = pred.shape
    gt2d = gt.astype(jnp.int32).reshape(B, 1)
    itemsize = jnp.dtype(pred.dtype).itemsize

    kind = _device_kind()
    is_v7 = ("v7" in kind) or ("7x" in kind)
    multi_core = is_v7  # per-tile "parallel" output only pays off with >1 TC per chip

    # batch-tile size: round to the dtype sublane multiple; pred f32-equivalent tile
    # budget gated by generation (v7x has only 64 MiB VMEM per TC).
    sub = max(8, 32 // max(1, itemsize))            # 8 f32 / 16 bf16 / 32 int8
    f32_tile_budget = (4 if is_v7 else 8) * 1024 * 1024
    if block_rows is None:
        tb = (f32_tile_budget // (C * 4)) // sub * sub
        tb = max(sub, min(tb, 4096))
    else:
        tb = max(sub, _round_up(block_rows, sub))
    tb = min(tb, _round_up(B, sub))
    num_tiles = pl.cdiv(B, tb)

    # VMEM budget: double-buffered native input tile + ~4 f32-tile-sized temporaries
    # (upcast, exp, iota, select) + slack; stays under v7x's 64 MiB physical VMEM.
    tile_bytes = tb * C * itemsize
    f32_tile_bytes = tb * C * 4
    vmem_limit = 2 * tile_bytes + 4 * f32_tile_bytes + 4 * 1024 * 1024
    vmem_limit = int(min(60 * 1024 * 1024, max(16 * 1024 * 1024, vmem_limit)))

    kernel = functools.partial(
        _cross_entropy_kernel,
        batch_size=B, tile_b=tb, scale=1.0 / B, accumulate=not multi_core,
    )

    common = dict(
        grid=(num_tiles,),
        in_specs=[
            pl.BlockSpec((tb, C), lambda i: (i, 0)),
            pl.BlockSpec((tb, 1), lambda i: (i, 0)),
        ],
        cost_estimate=pl.CostEstimate(
            flops=6 * B * C,
            transcendentals=B * C,
            bytes_accessed=B * C * itemsize + B * 4 + 8 * 128 * 4,
        ),
    )

    if multi_core:
        out = pl.pallas_call(
            kernel,
            out_shape=jax.ShapeDtypeStruct((num_tiles, 8, 128), jnp.float32),
            out_specs=pl.BlockSpec((1, 8, 128), lambda i: (i, 0, 0)),
            compiler_params=pltpu.CompilerParams(
                dimension_semantics=("parallel",),
                vmem_limit_bytes=vmem_limit,
            ),
            **common,
        )(pred, gt2d)
        return jnp.sum(out[:, 0, 0])          # partials already carry the 1/B scale
    else:
        out = pl.pallas_call(
            kernel,
            out_shape=jax.ShapeDtypeStruct((8, 128), jnp.float32),
            out_specs=pl.BlockSpec((8, 128), lambda i: (0, 0)),
            compiler_params=pltpu.CompilerParams(
                dimension_semantics=("arbitrary",),
                vmem_limit_bytes=vmem_limit,
            ),
            **common,
        )(pred, gt2d)
        return out[0, 0]                      # accumulator already holds mean loss


def _reference_cross_entropy(pred, gt):
    logp = jax.nn.log_softmax(pred.astype(jnp.float32), axis=-1)
    nll = -jnp.take_along_axis(logp, gt.astype(jnp.int32)[:, None], axis=-1)[:, 0]
    return jnp.mean(nll)


if __name__ == "__main__":
    key = jax.random.PRNGKey(0)

    # 1) small classifier call (single tile), f32
    k1, k2, k3, k4, k5, k6 = jax.random.split(key, 6)
    B, C = 8, 32
    pred = jax.random.normal(k1, (B, C), dtype=jnp.float32)
    gt = jax.random.randint(k2, (B,), 0, C, dtype=jnp.int32)
    loss = classifier_loss(pred, gt)
    jax.block_until_ready(loss)
    ref = _reference_cross_entropy(pred, gt)
    assert jnp.allclose(loss, ref, atol=2e-5, rtol=2e-5), ("f32 small", loss, ref)

    # 2) multi-tile grid with a partial (masked) last tile, f32, C not 128-aligned
    B, C = 300, 37
    pred = 3.0 * jax.random.normal(k3, (B, C), dtype=jnp.float32)
    gt = jax.random.randint(k4, (B,), 0, C, dtype=jnp.int32)
    loss = classifier_loss(pred, gt, block_rows=64)   # 5 tiles, last covers 44 rows
    jax.block_until_ready(loss)
    ref = _reference_cross_entropy(pred, gt)
    assert jnp.allclose(loss, ref, atol=2e-5, rtol=2e-5), ("f32 multi-tile", loss, ref)

    # 3) bf16 logits, multi-tile with partial last tile
    B, C = 130, 96
    pred = jax.random.normal(k5, (B, C), dtype=jnp.bfloat16)
    gt = jax.random.randint(k6, (B,), 0, C, dtype=jnp.int32)
    loss = classifier_loss(pred, gt, block_rows=48)   # 3 tiles, last covers 34 rows
    jax.block_until_ready(loss)
    ref = _reference_cross_entropy(pred, gt)
    assert jnp.allclose(loss, ref, atol=1e-4, rtol=1e-4), ("bf16 multi-tile", loss, ref)

    print("KERNEL_OK")
</pallas_src>

<mosaic_0001>
module attributes {stable_mosaic.version = 11 : i64} {
  func.func @_cross_entropy_kernel(%arg0: i32, %arg1: memref<8x32xf32, #tpu.memory_space<vmem>>, %arg2: memref<8x1xi32, #tpu.memory_space<vmem>>, %arg3: memref<8x128xf32, #tpu.memory_space<vmem>>) attributes {dimension_semantics = [#tpu.dimension_semantics<arbitrary>], iteration_bounds = array<i64: 1>, scalar_prefetch = 0 : i64, scratch_operands = 0 : i64, tpu.core_type = #tpu.core_type<tc>, window_params = [{transform_indices = @transform_0, window_bounds = array<i64: 8, 32>}, {transform_indices = @transform_1, window_bounds = array<i64: 8, 1>}, {pipeline_mode = #tpu.pipeline_mode<synchronous>, transform_indices = @transform_2, window_bounds = array<i64: 8, 128>}]} {
    %c0 = arith.constant 0 : index
    %c0_0 = arith.constant 0 : index
    %0 = vector.load %arg1[%c0, %c0_0] : memref<8x32xf32, #tpu.memory_space<vmem>>, vector<8x32xf32>
    %cst = arith.constant dense<0xFF800000> : vector<8xf32>
    %1 = vector.multi_reduction <maximumf>, %0, %cst [1] : vector<8x32xf32> to vector<8xf32>
    %2 = vector.shape_cast %1 : vector<8xf32> to vector<8x1xf32>
    %3 = vector.broadcast %2 : vector<8x1xf32> to vector<8x32xf32>
    %4 = arith.subf %0, %3 : vector<8x32xf32>
    %5 = math.exp %4 : vector<8x32xf32>
    %cst_1 = arith.constant dense<0.000000e+00> : vector<8xf32>
    %6 = vector.multi_reduction <add>, %5, %cst_1 [1] : vector<8x32xf32> to vector<8xf32>
    %7 = vector.shape_cast %6 : vector<8xf32> to vector<8x1xf32>
    %8 = tpu.iota {dimensions = array<i32: 1>} : vector<8x32xi32>
    %c0_2 = arith.constant 0 : index
    %c0_3 = arith.constant 0 : index
    %9 = vector.load %arg2[%c0_2, %c0_3] : memref<8x1xi32, #tpu.memory_space<vmem>>, vector<8x1xi32>
    %10 = vector.broadcast %9 : vector<8x1xi32> to vector<8x32xi32>
    %11 = arith.cmpi eq, %8, %10 : vector<8x32xi32>
    %c0_i32 = arith.constant 0 : i32
    %12 = arith.sitofp %c0_i32 : i32 to f32
    %13 = vector.broadcast %12 : f32 to vector<8x32xf32>
    %14 = arith.select %11, %0, %13 : vector<8x32xi1>, vector<8x32xf32>
    %cst_4 = arith.constant dense<0.000000e+00> : vector<8xf32>
    %15 = vector.multi_reduction <add>, %14, %cst_4 [1] : vector<8x32xf32> to vector<8xf32>
    %16 = vector.shape_cast %15 : vector<8xf32> to vector<8x1xf32>
    %17 = math.log %7 : vector<8x1xf32>
    %18 = arith.addf %17, %2 : vector<8x1xf32>
    %19 = arith.subf %18, %16 : vector<8x1xf32>
    %c8_i32 = arith.constant 8 : i32
    %20 = arith.muli %arg0, %c8_i32 : i32
    %21 = tpu.iota {dimensions = array<i32: 0>} : vector<8x1xi32>
    %22 = vector.broadcast %20 : i32 to vector<8x1xi32>
    %23 = arith.addi %22, %21 : vector<8x1xi32>
    %c8_i32_5 = arith.constant 8 : i32
    %24 = vector.broadcast %c8_i32_5 : i32 to vector<8x1xi32>
    %25 = arith.cmpi slt, %23, %24 : vector<8x1xi32>
    %cst_6 = arith.constant 0.000000e+00 : f32
    %26 = vector.broadcast %cst_6 : f32 to vector<8x1xf32>
    %27 = arith.select %25, %19, %26 : vector<8x1xi1>, vector<8x1xf32>
    %28 = vector.shape_cast %27 : vector<8x1xf32> to vector<1x8x1xf32>
    %cst_7 = arith.constant dense<0.000000e+00> : vector<1xf32>
    %29 = vector.multi_reduction <add>, %28, %cst_7 [1, 2] : vector<1x8x1xf32> to vector<1xf32>
    %30 = vector.shape_cast %29 : vector<1xf32> to vector<1x1x1xf32>
    %31 = vector.extract %30[0, 0, 0] : f32 from vector<1x1x1xf32>
    %cst_8 = arith.constant 1.250000e-01 : f32
    %32 = arith.mulf %31, %cst_8 : f32
    %c0_i32_9 = arith.constant 0 : i32
    %33 = arith.cmpi eq, %arg0, %c0_i32_9 : i32
    %34 = arith.extui %33 : i1 to i32
    %c0_i32_10 = arith.constant 0 : i32
    %35 = arith.cmpi ne, %34, %c0_i32_10 : i32
    scf.if %35 {
      %cst_15 = arith.constant 0.000000e+00 : f32
      %40 = vector.broadcast %cst_15 : f32 to vector<8x128xf32>
      %c0_16 = arith.constant 0 : index
      %c0_17 = arith.constant 0 : index
      %41 = vector.load %arg3[%c0_16, %c0_17] : memref<8x128xf32, #tpu.memory_space<vmem>>, vector<8x128xf32>
      tpu.vector_store %arg3[%c0_16, %c0_17], %40 {strides = array<i32>} : memref<8x128xf32, #tpu.memory_space<vmem>>, vector<8x128xf32>,
    } else {
    }
    %c0_11 = arith.constant 0 : index
    %c0_12 = arith.constant 0 : index
    %36 = vector.load %arg3[%c0_11, %c0_12] : memref<8x128xf32, #tpu.memory_space<vmem>>, vector<8x128xf32>
    %37 = vector.broadcast %32 : f32 to vector<8x128xf32>
    %38 = arith.addf %36, %37 : vector<8x128xf32>
    %c0_13 = arith.constant 0 : index
    %c0_14 = arith.constant 0 : index
    %39 = vector.load %arg3[%c0_13, %c0_14] : memref<8x128xf32, #tpu.memory_space<vmem>>, vector<8x128xf32>
    tpu.vector_store %arg3[%c0_13, %c0_14], %38 {strides = array<i32>} : memref<8x128xf32, #tpu.memory_space<vmem>>, vector<8x128xf32>,
    return
  }
  func.func @transform_0(%arg0: i32) -> (i32, i32) {
    %c0_i32 = arith.constant 0 : i32
    %c0_i32_0 = arith.constant 0 : i32
    return %arg0, %c0_i32 : i32, i32
  }
  func.func @transform_1(%arg0: i32) -> (i32, i32) {
    %c0_i32 = arith.constant 0 : i32
    %c0_i32_0 = arith.constant 0 : i32
    return %arg0, %c0_i32 : i32, i32
  }
  func.func @transform_2(%arg0: i32) -> (i32, i32) {
    %c0_i32 = arith.constant 0 : i32
    %c0_i32_0 = arith.constant 0 : i32
    %c0_i32_1 = arith.constant 0 : i32
    return %c0_i32, %c0_i32_0 : i32, i32
  }
}

</mosaic_0001>

<bundles_post_ra>
// kernel: tpu_custom_call.1
= control target key start
LH: loop header
LB: loop body
LE: loop exit
PB: predicated region body
PF: predicated region fallthrough
CT: control target
= control target key end

     0   :  { %vm13_vm0 = vcmask 261120   ;;  %s152_s0 = inlined_call_operand.vmem [shape: f32[8,32], index: 0, kind: input, shape index: {}]   ;;  %s153_s1 = inlined_call_operand.vmem [shape: s32[8,1], index: 1, kind: input, shape index: {}]   ;;  %s154_s2 = inlined_call_operand.hbm [shape: f32[8,128], index: 2, kind: output, shape index: {}]  }
   0x1   :  { %v12_v0 = vld [vmem:[%s152_s0] sm:$0xff] }
   0x2   :  { %7 = vsyncpa [#allocation3], 0  ;;  %v14_v1 = vsel %vm13_vm0, %v12_v0, -inf  ;;  %v114_v2 = vmov 0   ;;  %v25_v3 = vld [vmem:[%s153_s1] sm:$0xff]  ;;  %v23_v7 = vlaneseq  ;;  %vm45_vm2 = vcmask 7168  }
   0x3   :  { %85 = vset.pattern.permute.xlu0 %v114_v2  ;;  %s115_s13 = smov [#allocation2]  }
   0x4   :  { %15 = vmax.xlane.f32.xlu0 %v14_v1  ;;  %v24_v8 = vand.u32 127, %v23_v7  ;;  %s72_s14 = sshll.u32 %s115_s13, 4  ;;  %s73_s14 = int_to_ptr.vmem [resolvable:$true] %s72_s14 }
   0x5   :  { %s90_s15 = scalar_lea.vmem %s73_s14, 128  ;;  %p95_p1 = scmp.lt.s32.totalorder %s73_s14, %s73_s14 }
   0x6   :  { %p91_p0 = scmp.ne.s32.totalorder %s73_s14, %s90_s15  ;;  %p96_p2 = scmp.lt.s32.totalorder %s90_s15, %s90_s15 }
   0x8   :  { %p97_p3 = por %p96_p2, %p95_p1 }
   0xa   :  { %p98_p4 = pnand %p97_p3, %p91_p0 }
  0x1a   :  { %27 = vperm.xlu0 %85, %v25_v3  }
  0x91   :  { %v16_v4 = vpop.xlane.xlu0 %15 }
  0x92   :  { %v17_v5 = vsub.f32 %v12_v0, %v16_v4 }
  0x94   :  { %v18_v6 = vmul.f32 1.442695, %v17_v5 }
  0x96   :  { %86 = vpow2.f32 %v18_v6 }
  0x99   :  { %v28_v9 = vpop.permute.xlu0 %27 }
  0x9a   :  { %vm29_vm1 = vcmp.eq.s32.totalorder %v24_v8, %v28_v9 }
  0x9b   :  { %v30_v11 = vsel %vm29_vm1, %v12_v0, 0.0 }
  0x9c   :  { %v31_v13 = vsel %vm13_vm0, %v30_v11, 0.0 }
  0xa0   :  { %v87_v10 = vpop.eup %86 }
  0xa1   :  { %v20_v12 = vsel %vm13_vm0, %v87_v10, 0.0 }
  0xa2   :  { %21 = vadd.xlane.f32.xlu1 %v20_v12 }
  0xa6   :  { %32 = vadd.xlane.f32.xlu1 %v31_v13 }
 0x12f   :  { %v22_v14 = vpop.xlane.xlu1 %21 }
 0x130   :  { %88 = vlog2.f32 %v22_v14 }
 0x133   :  { %v33_v17 = vpop.xlane.xlu1 %32 }
 0x13a   :  { %v89_v15 = vpop.eup %88 }
 0x13b   :  { %v35_v16 = vmul.f32 0.6931472, %v89_v15 }
 0x13d   :  { %v36_v18 = vadd.f32 %v35_v16, %v16_v4 }
 0x13f   :  { %v37_v19 = vsub.f32 %v36_v18, %v33_v17 }
 0x141   :  { %v46_v20 = vsel %vm45_vm2, %v37_v19, 0.0 }
 0x142   :  { %47 = vadd.xlane.f32.xlu1 %v46_v20 }
 0x1cf   :  { %v48_v21 = vpop.xlane.xlu1 %47 }
 0x1d0   :  { %v49_v22 = vrot.slane %v48_v21, 4 }
 0x1d2   :  { %v50_v23 = vadd.f32 %v49_v22, %v48_v21 }
 0x1d4   :  { %v51_v24 = vrot.slane %v50_v23, 2 }
 0x1d6   :  { %v52_v25 = vadd.f32 %v51_v24, %v50_v23 }
 0x1d8   :  { %v53_v26 = vrot.slane %v52_v25, 1 }
 0x1da   :  { %v54_v27 = vadd.f32 %v53_v26, %v52_v25 }
 0x1dc   :  { %80 = vpush %v54_v27 }
 0x20d   :  { %s81_s0 = spop %80 }
 0x20e   :  { %s56_s1 = smul.f32 0.125, %s81_s0 }
 0x210   :  { %v63_v28 = vstv %s56_s1 }
 0x211   :  { %65 = vst [vmem:[#allocation2] sm:$0xff] %v63_v28 }
 0x212   :  { %101 = shalt.err (!%p98_p4)
}
 0x213   :  { %s102_s18 = scalar_lea.hbm %s154_s2, 128 }
 0x214   :  { %p103_p5 = scmp.ne.s32.totalorder %s154_s2, %s102_s18  ;;  %p106_p6 = scmp.lt.u32.totalorder %s102_s18, %s154_s2 }
 0x216   :  { %p108_p7 = pnand %p106_p6, %p103_p5 }
 0x218   :  { %111 = shalt.err (!%p108_p7)
}
 0x219   :  { %75 = dma.vmem_to_hbm [thread:$0]  %s73_s14, 128, %s154_s2, [#allocation3]  }
 0x21a   :  { %112 = dma.done.wait [#allocation3], 128  }
 0x21b   :  { %113 = vsyncadd [#allocation3], 4294967168 }
 0x21c   :  { %79 = vsyncpa [#allocation3], 1 }

</bundles_post_ra>
